<compile_context>
chip_gen: v7x
topology: tpu7x:2x2x1
jax: 0.10.0
libtpu: 0.0.40
codegen_flags: <defaults>
</compile_context>

<pallas_src>
import jax
import jax.numpy as jnp
from jax.experimental import pallas as pl
from jax.experimental.pallas import tpu as pltpu

IN_DIM = 3
HID_DIM = 64
OUT_DIM = 28 * 28  # 784

_LANE = 128
_SUBLANE = 8


def _round_up(n, m):
    return ((n + m - 1) // m) * m


def _decoder_kernel(x_ref, w1_ref, b1_ref, w2_ref, b2_ref, o_ref):
    # ---- Layer 1: Linear(3 -> 64) + ReLU -----------------------------------
    # Plain MXU dot (f32 in, f32 acc).  The MXU is otherwise nearly idle in
    # this DMA-bound kernel, so this is the simplest / lowest-pressure form.
    h = jnp.dot(x_ref[...], w1_ref[...],
                preferred_element_type=jnp.float32) + b1_ref[...]   # [TM, 64]
    h = jnp.maximum(h, 0.0)                                         # ReLU

    # ---- Layer 2: Linear(64 -> 784) on the MXU -----------------------------
    # bf16 inputs, f32 accumulation; bias add in f32.
    y = jnp.dot(h.astype(jnp.bfloat16), w2_ref[...],
                preferred_element_type=jnp.float32)                 # [TM, 784]
    y = y + b2_ref[...]                                             # [1, 784] bcast
    o_ref[...] = y.astype(o_ref.dtype)


def _vmem_limit_bytes(block_m, out_bytes_per_elem):
    """Derived scoped-VMEM budget: double-buffered tiles + params, +20%."""
    out_pad = _round_up(OUT_DIM, _LANE)          # 896 lanes in VMEM layout
    x_tile = block_m * _LANE * 4                 # [block_m, 3] lane-padded f32
    out_tile = block_m * out_pad * out_bytes_per_elem
    w1 = _round_up(IN_DIM, _SUBLANE) * _LANE * 4
    b1 = _SUBLANE * _LANE * 4
    w2 = HID_DIM * out_pad * 2                   # bf16
    b2 = _SUBLANE * out_pad * 4
    total = 2 * (x_tile + out_tile) + 2 * (w1 + b1 + w2 + b2)
    limit = int(total * 1.2)
    limit = max(limit, 4 * 1024 * 1024)          # floor
    return min(limit, 48 * 1024 * 1024)          # cap: v7x has 64 MiB physical


def decoder_forward(x, w1, b1, w2, b2, *, block_m=None, out_dtype=jnp.float32,
                    pipeline_buffers=None):
    """x: [B, 3] f32; w1 [3,64], b1 [1,64], w2 [64,784], b2 [1,784] f32.

    Returns [B, 784] in `out_dtype` (f32 by default; pass jnp.bfloat16 to
    halve the dominant output-writeback HBM traffic if downstream allows).
    The 64x784 matmul runs with bf16 MXU inputs and f32 accumulation.
    """
    B = x.shape[0]
    if block_m is None:
        # >= 2 grid steps so both v7x TensorCores get work; grow to 2048 rows
        # for large B to amortize per-step grid overhead.  VMEM at 2048 rows
        # is ~15 MB of f32 tiles -- well inside every generation's budget.
        block_m = max(_SUBLANE, min(2048, _round_up(pl.cdiv(B, 2), _SUBLANE)))
    grid_m = pl.cdiv(B, block_m)

    # bf16 weights for the dominant matmul: halves the w2 DMA and doubles MXU
    # throughput.  Layer-1 params, biases and accumulation stay f32.
    w2_bf16 = w2.astype(jnp.bfloat16)

    out_bytes = jnp.dtype(out_dtype).itemsize
    flops = 2 * B * (IN_DIM * HID_DIM + HID_DIM * OUT_DIM)
    bytes_accessed = (
        x.size * 4 + B * OUT_DIM * out_bytes       # activations in / out
        + w1.size * 4 + b1.size * 4                # layer-1 params (f32)
        + w2_bf16.size * 2 + b2.size * 4           # layer-2 params (bf16 / f32)
    )

    # Optional deeper pipelining on the streamed arrays (v7x experiment).
    x_kwargs = {}
    out_kwargs = {}
    if pipeline_buffers is not None:
        x_kwargs["pipeline_mode"] = pl.Buffered(pipeline_buffers)
        out_kwargs["pipeline_mode"] = pl.Buffered(pipeline_buffers)

    return pl.pallas_call(
        _decoder_kernel,
        out_shape=jax.ShapeDtypeStruct((B, OUT_DIM), out_dtype),
        grid=(grid_m,),
        in_specs=[
            # Batch-tiled activations.
            pl.BlockSpec((block_m, IN_DIM), lambda i: (i, 0), **x_kwargs),   # x
            # Weights / biases: constant index_map -> resident in VMEM,
            # DMA'd once instead of per grid step.
            pl.BlockSpec((IN_DIM, HID_DIM), lambda i: (0, 0)),               # w1
            pl.BlockSpec((1, HID_DIM), lambda i: (0, 0)),                    # b1
            pl.BlockSpec((HID_DIM, OUT_DIM), lambda i: (0, 0)),              # w2 (bf16)
            pl.BlockSpec((1, OUT_DIM), lambda i: (0, 0)),                    # b2
        ],
        # Full 784-wide (lane-dense) output rows per tile; no padding to 896.
        out_specs=pl.BlockSpec((block_m, OUT_DIM), lambda i: (i, 0), **out_kwargs),
        compiler_params=pltpu.CompilerParams(
            dimension_semantics=("parallel",),   # shard batch tiles across TCs
            vmem_limit_bytes=_vmem_limit_bytes(block_m, out_bytes),
        ),
        cost_estimate=pl.CostEstimate(
            flops=flops, transcendentals=0, bytes_accessed=bytes_accessed),
    )(x, w1, b1, w2_bf16, b2)


def init_params(key):
    """Deterministic init mimicking nn.Linear defaults (U(-1/sqrt(fan_in), +))."""
    k1, k2, k3, k4 = jax.random.split(key, 4)
    lim1 = 1.0 / jnp.sqrt(jnp.float32(IN_DIM))
    lim2 = 1.0 / jnp.sqrt(jnp.float32(HID_DIM))
    # Stored as [in, out] (transposed vs. PyTorch's [out, in]) for x @ W.
    w1 = jax.random.uniform(k1, (IN_DIM, HID_DIM), jnp.float32, -lim1, lim1)
    b1 = jax.random.uniform(k2, (1, HID_DIM), jnp.float32, -lim1, lim1)
    w2 = jax.random.uniform(k3, (HID_DIM, OUT_DIM), jnp.float32, -lim2, lim2)
    b2 = jax.random.uniform(k4, (1, OUT_DIM), jnp.float32, -lim2, lim2)
    return w1, b1, w2, b2


def reference_forward_f32(x, w1, b1, w2, b2):
    """Pure-f32 reference (the PyTorch module's numerics)."""
    h = jnp.maximum(x @ w1 + b1, 0.0)
    return h @ w2 + b2


def reference_forward_mixed(x, w1, b1, w2, b2):
    """Reference following the kernel's mixed-precision path exactly."""
    h = jnp.maximum(jnp.dot(x, w1, preferred_element_type=jnp.float32) + b1, 0.0)
    y = jnp.dot(h.astype(jnp.bfloat16), w2.astype(jnp.bfloat16),
                preferred_element_type=jnp.float32)
    return y + b2


if __name__ == "__main__":
    key = jax.random.PRNGKey(0)
    k_x, k_p = jax.random.split(key)

    # Small but grid-exercising problem: default block_m gives 2 batch tiles.
    B = 256
    x = jax.random.normal(k_x, (B, IN_DIM), jnp.float32)
    w1, b1, w2, b2 = init_params(k_p)

    out = decoder_forward(x, w1, b1, w2, b2)          # default block_m -> 2 steps
    out = jax.block_until_ready(out)

    ref_mixed = reference_forward_mixed(x, w1, b1, w2, b2)
    ref_f32 = reference_forward_f32(x, w1, b1, w2, b2)

    assert out.shape == (B, OUT_DIM), out.shape
    # Tight check against the identical mixed-precision computation.
    assert jnp.allclose(out, ref_mixed, atol=1e-3, rtol=1e-3), \
        "mismatch vs mixed-precision reference"
    # Loose check against the pure-f32 PyTorch-equivalent numerics
    # (bf16 MXU inputs for layer-2 => relaxed tolerance).
    assert jnp.allclose(out, ref_f32, atol=5e-2, rtol=5e-2), \
        "mismatch vs f32 reference"

    # Also exercise a non-default tile (partial last tile, masked writeback).
    out2 = jax.block_until_ready(
        decoder_forward(x, w1, b1, w2, b2, block_m=96))
    assert jnp.allclose(out2, ref_mixed, atol=1e-3, rtol=1e-3), \
        "mismatch vs mixed-precision reference (partial tile)"

    print("KERNEL_OK")
</pallas_src>

<mosaic_0001>
module attributes {stable_mosaic.version = 11 : i64} {
  func.func @_decoder_kernel(%arg0: i32, %arg1: memref<128x3xf32, #tpu.memory_space<vmem>>, %arg2: memref<3x64xf32, #tpu.memory_space<vmem>>, %arg3: memref<1x64xf32, #tpu.memory_space<vmem>>, %arg4: memref<64x784xbf16, #tpu.memory_space<vmem>>, %arg5: memref<1x784xf32, #tpu.memory_space<vmem>>, %arg6: memref<128x784xf32, #tpu.memory_space<vmem>>) attributes {dimension_semantics = [#tpu.dimension_semantics<parallel>], iteration_bounds = array<i64: 2>, scalar_prefetch = 0 : i64, scratch_operands = 0 : i64, tpu.core_type = #tpu.core_type<tc>, window_params = [{transform_indices = @transform_0, window_bounds = array<i64: 128, 3>}, {pipeline_mode = #tpu.pipeline_mode<synchronous>, transform_indices = @transform_1, window_bounds = array<i64: 3, 64>}, {pipeline_mode = #tpu.pipeline_mode<synchronous>, transform_indices = @transform_2, window_bounds = array<i64: 1, 64>}, {pipeline_mode = #tpu.pipeline_mode<synchronous>, transform_indices = @transform_3, window_bounds = array<i64: 64, 784>}, {pipeline_mode = #tpu.pipeline_mode<synchronous>, transform_indices = @transform_4, window_bounds = array<i64: 1, 784>}, {transform_indices = @transform_5, window_bounds = array<i64: 128, 784>}]} {
    %c0 = arith.constant 0 : index
    %c0_0 = arith.constant 0 : index
    %0 = vector.load %arg1[%c0, %c0_0] : memref<128x3xf32, #tpu.memory_space<vmem>>, vector<128x3xf32>
    %c0_1 = arith.constant 0 : index
    %c0_2 = arith.constant 0 : index
    %1 = vector.load %arg2[%c0_1, %c0_2] : memref<3x64xf32, #tpu.memory_space<vmem>>, vector<3x64xf32>
    %cst = arith.constant dense<0.000000e+00> : vector<128x64xf32>
    %2 = tpu.matmul %0, %1, %cst {dimension_numbers = #tpu.dot_dimension_numbers<[1], [0], [0], [1], [0, 0, 1, 1], [], []>} : vector<128x3xf32>, vector<3x64xf32>, vector<128x64xf32> -> vector<128x64xf32>
    %c0_3 = arith.constant 0 : index
    %c0_4 = arith.constant 0 : index
    %3 = vector.load %arg3[%c0_3, %c0_4] : memref<1x64xf32, #tpu.memory_space<vmem>>, vector<1x64xf32>
    %4 = vector.broadcast %3 : vector<1x64xf32> to vector<128x64xf32>
    %5 = arith.addf %2, %4 : vector<128x64xf32>
    %cst_5 = arith.constant 0.000000e+00 : f32
    %6 = vector.broadcast %cst_5 : f32 to vector<128x64xf32>
    %7 = arith.maximumf %5, %6 : vector<128x64xf32>
    %8 = arith.truncf %7 : vector<128x64xf32> to vector<128x64xbf16>
    %c0_6 = arith.constant 0 : index
    %c0_7 = arith.constant 0 : index
    %9 = vector.load %arg4[%c0_6, %c0_7] : memref<64x784xbf16, #tpu.memory_space<vmem>>, vector<64x784xbf16>
    %cst_8 = arith.constant dense<0.000000e+00> : vector<128x784xf32>
    %10 = tpu.matmul %8, %9, %cst_8 {dimension_numbers = #tpu.dot_dimension_numbers<[1], [0], [0], [1], [0, 0, 1, 1], [], []>} : vector<128x64xbf16>, vector<64x784xbf16>, vector<128x784xf32> -> vector<128x784xf32>
    %c0_9 = arith.constant 0 : index
    %c0_10 = arith.constant 0 : index
    %11 = vector.load %arg5[%c0_9, %c0_10] : memref<1x784xf32, #tpu.memory_space<vmem>>, vector<1x784xf32>
    %12 = vector.broadcast %11 : vector<1x784xf32> to vector<128x784xf32>
    %13 = arith.addf %10, %12 : vector<128x784xf32>
    %c0_11 = arith.constant 0 : index
    %c0_12 = arith.constant 0 : index
    %14 = vector.load %arg6[%c0_11, %c0_12] : memref<128x784xf32, #tpu.memory_space<vmem>>, vector<128x784xf32>
    tpu.vector_store %arg6[%c0_11, %c0_12], %13 {strides = array<i32>} : memref<128x784xf32, #tpu.memory_space<vmem>>, vector<128x784xf32>,
    return
  }
  func.func @transform_0(%arg0: i32) -> (i32, i32) {
    %c0_i32 = arith.constant 0 : i32
    %c0_i32_0 = arith.constant 0 : i32
    return %arg0, %c0_i32 : i32, i32
  }
  func.func @transform_1(%arg0: i32) -> (i32, i32) {
    %c0_i32 = arith.constant 0 : i32
    %c0_i32_0 = arith.constant 0 : i32
    %c0_i32_1 = arith.constant 0 : i32
    return %c0_i32, %c0_i32_0 : i32, i32
  }
  func.func @transform_2(%arg0: i32) -> (i32, i32) {
    %c0_i32 = arith.constant 0 : i32
    %c0_i32_0 = arith.constant 0 : i32
    %c0_i32_1 = arith.constant 0 : i32
    return %c0_i32, %c0_i32_0 : i32, i32
  }
  func.func @transform_3(%arg0: i32) -> (i32, i32) {
    %c0_i32 = arith.constant 0 : i32
    %c0_i32_0 = arith.constant 0 : i32
    %c0_i32_1 = arith.constant 0 : i32
    return %c0_i32, %c0_i32_0 : i32, i32
  }
  func.func @transform_4(%arg0: i32) -> (i32, i32) {
    %c0_i32 = arith.constant 0 : i32
    %c0_i32_0 = arith.constant 0 : i32
    %c0_i32_1 = arith.constant 0 : i32
    return %c0_i32, %c0_i32_0 : i32, i32
  }
  func.func @transform_5(%arg0: i32) -> (i32, i32) {
    %c0_i32 = arith.constant 0 : i32
    %c0_i32_0 = arith.constant 0 : i32
    return %arg0, %c0_i32 : i32, i32
  }
}

</mosaic_0001>

<bundles_post_ra>
// kernel: tpu_custom_call.1
= control target key start
LH: loop header
LB: loop body
LE: loop exit
PB: predicated region body
PF: predicated region fallthrough
CT: control target
= control target key end

     0   :  { %s1579_s18 = smov 0   ;;  %s2099_s0 = inlined_call_operand.vmem [shape: f32[256,3], index: 0, kind: input, shape index: {}]   ;;  %s2100_s1 = inlined_call_operand.vmem [shape: f32[3,64], index: 1, kind: input, shape index: {}]   ;;  %s2101_s2 = inlined_call_operand.vmem [shape: f32[1,64], index: 2, kind: input, shape index: {}]   ;;  %s2102_s3 = inlined_call_operand.vmem [shape: bf16[64,784], index: 3, kind: input, shape index: {}]   ;;  %s2103_s4 = inlined_call_operand.vmem [shape: f32[1,784], index: 4, kind: input, shape index: {}]   ;;  %s2104_s5 = inlined_call_operand.vmem [shape: f32[256,784], index: 5, kind: output, shape index: {}]  }
   0x1 LB: > { %s1322_s19 = sadd.s32 4294967295, %s1546_s18   ;;  %p1326_p0 = scmp.ge.s32.totalorder %s1546_s18, 1  ;;  %s1546_s18 = sphi %s1579_s18, %s15_s18  }
   0x2   : > { %p188_p1 = scmp.lt.s32.totalorder %s1546_s18, 3 }
   0x4   : > { %p189_p2 = pnand %p1326_p0, %p188_p1 }
   0x5   : > { %v247_v0 = vld [vmem:[%s2100_s1] sm:$0x7] (!%p189_p2)  ;;  %vm304_vm0 = vcmask (!%p189_p2), 1042432   ;;  %s1327_s22 = sshll.u32 (!%p189_p2), %s1322_s19, 4  ;;  %v1505_v3 = vld [vmem:[%s2102_s3 + $0xc] ss:$28 sps:$4 sm:$0xff] (!%p189_p2)  }
   0x6   : > { %192 = sbr.rel (%p189_p2) target bundleno = 575 (0x23f), region = 40  ;;  %1440 = vmatprep.subr.msk.mxu0 (!%p189_p2), %vm304_vm0, %v247_v0  ;;  %p218_p3 = scmp.lt.s32.totalorder (!%p189_p2), %s1327_s22, 31  ;;  %v1500_v1 = vld [vmem:[%s2102_s3 + $0x4] ss:$28 sps:$4 sm:$0xff] (!%p189_p2)   ;;  %v1506_v4 = vld [vmem:[%s2102_s3 + $0x3c] ss:$28 sps:$4 sm:$0xff] (!%p189_p2)  }
   0x7   : > { %v1502_v2 = vld [vmem:[%s2102_s3] ss:$28 sps:$4 sm:$0xff] (!%p189_p2)   ;;  %1441 = vmatpush3.msk.msra.mxu0 (!%p189_p2), %vm304_vm0, %v247_v0  ;;  %715 = vmatprep.subr.bf16.mxu1 (!%p189_p2), %v1500_v1  ;;  %v1508_v5 = vld [vmem:[%s2102_s3 + $0x38] ss:$28 sps:$4 sm:$0xff] (!%p189_p2)   ;;  %vm255_vm1 = vcmask (!%p189_p2), 23552   ;;  %v1548_v33 = vmov (!%p189_p2), 0  }
   0x8   : > { %716 = vmatpush1.bf16.msra.mxu1 (!%p189_p2), %v1502_v2  ;;  %v1503_v6 = vld [vmem:[%s2102_s3 + $0x8] ss:$28 sps:$4 sm:$0xff] (!%p189_p2)   ;;  %828 = vmatprep.subr.bf16.mxu0 (!%p189_p2), %v1505_v3  ;;  %v1512_v8 = vld [vmem:[%s2102_s3 + $0x74] ss:$28 sps:$4 sm:$0xff] (!%p189_p2)   ;;  %v1509_v13 = vld [vmem:[%s2102_s3 + $0x40] ss:$28 sps:$4 sm:$0xff] (!%p189_p2)  }
   0x9   : > { %717 = vmatprep.subr.bf16.mxu1 (!%p189_p2), %v1506_v4  ;;  %v1511_v7 = vld [vmem:[%s2102_s3 + $0x44] ss:$28 sps:$4 sm:$0xff] (!%p189_p2)   ;;  %v1517_v26 = vld [vmem:[%s2102_s3 + $0x7c] ss:$28 sps:$4 sm:$0xff] (!%p189_p2)   ;;  %v1514_v27 = vld [vmem:[%s2102_s3 + $0x70] ss:$28 sps:$4 sm:$0xff] (!%p189_p2)   ;;  %747 = vmatprep.mubr.bf16.mxu1 (!%p189_p2), %v1548_v33 }
   0xa   : > { %v1515_v28 = vld [vmem:[%s2102_s3 + $0x78] ss:$28 sps:$4 sm:$0xff] (!%p189_p2)   ;;  %v1518_v29 = vld [vmem:[%s2102_s3 + $0xac] ss:$28 sps:$4 sm:$0xff] (!%p189_p2)   ;;  %v1689_v36 = vld [vmem:[%s2101_s2] ss:$0 sm:$0xff] (!%p189_p2) }
   0xb   : > { %v1523_v30 = vld [vmem:[%s2102_s3 + $0xb4] ss:$28 sps:$4 sm:$0xff] (!%p189_p2)   ;;  %v1520_v31 = vld [vmem:[%s2102_s3 + $0xa8] ss:$28 sps:$4 sm:$0xff] (!%p189_p2)   ;;  %vm690_vm2 = vcmask (!%p189_p2), 523264   ;;  %vm1157_vm3 = vcmask (!%p189_p2), 130048  }
   0xc   : > { %718 = vmatpush1.bf16.msra.mxu1 (!%p189_p2), %v1508_v5  ;;  %v1521_v32 = vld [vmem:[%s2102_s3 + $0xb0] ss:$28 sps:$4 sm:$0xff] (!%p189_p2)   ;;  %v1533_v35 = vld [vmem:[%s2102_s3 + $0x18] ss:$28 sps:$4 sm:$0xff] (!%p189_p2)   ;;  %v1527_v56 = vld [vmem:[%s2102_s3 + $0x48] ss:$28 sps:$4 sm:$0xff] (!%p189_p2)  }
   0xd   : > { %s2106_s22 = smov (!%p218_p3, %s1327_s22), 31  ;;  %719 = vmatprep.subr.bf16.mxu1 %v1512_v8  ;;  %v1526_v34 = vld [vmem:[%s2102_s3 + $0x14] ss:$28 sps:$4 sm:$0xff]   ;;  %v1529_v49 = vld [vmem:[%s2102_s3 + $0x4c] ss:$28 sps:$4 sm:$0xff]  }
   0xe   : > { %s1328_s8 = sshll.u32 %s2106_s22, 3  ;;  %v1524_v45 = vld [vmem:[%s2102_s3 + $0x10] ss:$28 sps:$4 sm:$0xff]   ;;  %v1532_v59 = vld [vmem:[%s2102_s3 + $0x84] ss:$28 sps:$4 sm:$0xff]   ;;  %s1490_s16 = smul.u32 56, %s2106_s22 }
   0xf   : > { %s1614_s13 = scalar_lea.vmem %s2099_s0, %s1328_s8  ;;  %v1537_v53 = vld [vmem:[%s2102_s3 + $0x50] ss:$28 sps:$4 sm:$0xff]   ;;  %v1530_v3 = vld [vmem:[%s2102_s3 + $0x80] ss:$28 sps:$4 sm:$0xff]   ;;  %v1538_v4 = vld [vmem:[%s2102_s3 + $0x88] ss:$28 sps:$4 sm:$0xff]  }
  0x10   : > { %v231_v9 = vld [vmem:[%s1614_s13] sm:$0xff]  ;;  %v232_v10 = vld [vmem:[%s1614_s13 + $0x8] sm:$0xff]  ;;  %v233_v11 = vld [vmem:[%s1614_s13 + $0x10] sm:$0xff]  ;;  %720 = vmatpush1.bf16.msra.mxu1 %v1514_v27  ;;  %s1842_s20 = scalar_lea.vmem %s2104_s5, %s1490_s16 }
  0x11   : > { %1442 = vmatprep.mubr.msk.f32.mxu0 %vm255_vm1, %v231_v9  ;;  %v234_v12 = vld [vmem:[%s1614_s13 + $0x18] sm:$0xff]  ;;  %v235_v14 = vld [vmem:[%s1614_s13 + $0x20] sm:$0xff]  ;;  %v236_v15 = vld [vmem:[%s1614_s13 + $0x28] sm:$0xff]  ;;  %721 = vmatprep.subr.bf16.mxu1 %v1518_v29 }
  0x12   : > { %1443 = vmatmul.mubr.msk.f32.vlgmr.msra.gmra.mrb[0].mxu0 %vm255_vm1, %v232_v10  ;;  %v237_v16 = vld [vmem:[%s1614_s13 + $0x30] sm:$0xff]  ;;  %v238_v17 = vld [vmem:[%s1614_s13 + $0x38] sm:$0xff]  ;;  %v239_v18 = vld [vmem:[%s1614_s13 + $0x40] sm:$0xff] }
  0x13   : > { %1445 = vmatprep.mubr.msk.f32.mxu0 %vm255_vm1, %v233_v11  ;;  %829 = vmatpush1.bf16.msra.mxu0 %v1503_v6  ;;  %v240_v19 = vld [vmem:[%s1614_s13 + $0x48] sm:$0xff]  ;;  %v241_v20 = vld [vmem:[%s1614_s13 + $0x50] sm:$0xff]  ;;  %v242_v21 = vld [vmem:[%s1614_s13 + $0x58] sm:$0xff] }
  0x14   : > { %830 = vmatprep.subr.bf16.mxu0 %v1511_v7  ;;  %v243_v22 = vld [vmem:[%s1614_s13 + $0x60] sm:$0xff]  ;;  %v244_v23 = vld [vmem:[%s1614_s13 + $0x68] sm:$0xff]  ;;  %v245_v24 = vld [vmem:[%s1614_s13 + $0x70] sm:$0xff]  ;;  %722 = vmatpush1.bf16.msra.mxu1 %v1520_v31 }
  0x15   : > { %v246_v25 = vld [vmem:[%s1614_s13 + $0x78] sm:$0xff]  ;;  %941 = vmatprep.subr.bf16.mxu1 %v1526_v34 }
  0x16   : > { %1446 = vmatmul.mubr.msk.f32.gmra.mrb[2].mxu0 %vm255_vm1, %v234_v12  ;;  %v1536_v6 = vld [vmem:[%s2102_s3 + $0xbc] ss:$28 sps:$4 sm:$0xff]  }
  0x17   : > { %1448 = vmatprep.mubr.msk.f32.mxu0 %vm255_vm1, %v235_v14  ;;  %831 = vmatpush1.bf16.msra.mxu0 %v1509_v13  ;;  %v1539_v9 = vld [vmem:[%s2102_s3 + $0xc0] ss:$28 sps:$4 sm:$0xff]   ;;  %v1534_v14 = vld [vmem:[%s2102_s3 + $0xb8] ss:$28 sps:$4 sm:$0xff]  }
  0x18   : > { %832 = vmatprep.subr.bf16.mxu0 %v1517_v26 }
  0x1a   : > { %1449 = vmatmul.mubr.msk.f32.gmra.mrb[4].mxu0 %vm255_vm1, %v236_v15 }
  0x1b   : > { %1451 = vmatprep.mubr.msk.f32.mxu0 %vm255_vm1, %v237_v16  ;;  %833 = vmatpush1.bf16.msra.mxu0 %v1515_v28 }
  0x1c   : > { %834 = vmatprep.subr.bf16.mxu0 %v1523_v30 }
  0x1e   : > { %1452 = vmatmul.mubr.msk.f32.gmra.mrb[6].mxu0 %vm255_vm1, %v238_v17 }
  0x1f   : > { %1454 = vmatprep.mubr.msk.f32.mxu0 %vm255_vm1, %v239_v18  ;;  %835 = vmatpush1.bf16.msra.mxu0 %v1521_v32 }
  0x20   : > { %1466 = vmatprep.subr.bf16.mxu0 %v1533_v35 }
  0x22   : > { %1455 = vmatmul.mubr.msk.f32.gmra.mrb[8].mxu0 %vm255_vm1, %v240_v19 }
  0x23   : > { %1457 = vmatprep.mubr.msk.f32.mxu0 %vm255_vm1, %v241_v20 }
  0x26   : > { %1458 = vmatmul.mubr.msk.f32.gmra.mrb[10].mxu0 %vm255_vm1, %v242_v21 }
  0x27   : > { %1460 = vmatprep.mubr.msk.f32.mxu0 %vm255_vm1, %v243_v22 }
  0x2a   : > { %1461 = vmatmul.mubr.msk.f32.gmra.mrb[12].mxu0 %vm255_vm1, %v244_v23 }
  0x2b   : > { %1463 = vmatprep.mubr.msk.f32.mxu0 %vm255_vm1, %v245_v24 }
  0x2e   : > { %1464 = vmatmul.mubr.msk.f32.gmra.mrb[14].mxu0 %vm255_vm1, %v246_v25 }
  0x2f   : > { %860 = vmatprep.mubr.bf16.mxu0 %v1548_v33 }
  0xe5   : > { %v1444_v37 = vpop.f32.mrb[0].mxu0 }
  0xe6   : > { %v380_v38 = vadd.f32 %v1444_v37, %v1689_v36  ;;  %v374_v39 = vpop.f32.mrb[1].mxu0 }
  0xe7   : > { %v375_v40 = vadd.f32 %v1689_v36, %v374_v39 }
  0xe8   : > { %v454_v41 = vmax.f32 %v380_v38, 0.0 }
  0xe9   : > { %v453_v42 = vmax.f32 %v375_v40, 0.0  ;;  %v1447_v43 = vpop.f32.mrb[2].mxu0 }
  0xea   : > { %v390_v44 = vadd.f32 %v1447_v43, %v1689_v36  ;;  %v384_v46 = vpop.f32.mrb[3].mxu0 }
  0xeb   : > { %v1697_v47 = vpack.c.bf16 %v454_v41, %v453_v42  ;;  %v385_v48 = vadd.f32 %v1689_v36, %v384_v46 }
  0xec   : > { %v456_v50 = vmax.f32 %v390_v44, 0.0  ;;  %v1822_v44 = vld [vmem:[%s2103_s4] sm:$0x7f] }
  0xed   : > { %v455_v51 = vmax.f32 %v385_v48, 0.0  ;;  %1377 = vmatmul.mubr.msk.bf16.vlgmr.msra.gmra.mrb[0].mxu1 %vm690_vm2, %v1697_v47  ;;  %1385 = vmatmul.mubr.msk.bf16.vlgmr.msra.gmra.mrb[16].mxu0 %vm690_vm2, %v1697_v47  ;;  %v1450_v52 = vpop.f32.mrb[4].mxu0 }
  0xee   : > { %942 = vmatpush1.bf16.msra.mxu1 %v1524_v45  ;;  %v400_v54 = vadd.f32 %v1450_v52, %v1689_v36  ;;  %757 = vmatprep.mubr.bf16.mxu1 %v1548_v33  ;;  %v394_v55 = vpop.f32.mrb[5].mxu0 }
  0xef   : > { %v1715_v57 = vpack.c.bf16 %v456_v50, %v455_v51  ;;  %870 = vmatprep.mubr.bf16.mxu0 %v1548_v33  ;;  %v395_v58 = vadd.f32 %v1689_v36, %v394_v55  ;;  %943 = vmatprep.subr.bf16.mxu1 %v1529_v49 }
  0xf0   : > { %v458_v60 = vmax.f32 %v400_v54, 0.0  ;;  %1467 = vmatpush3.bf16.msra.mxu0 %v1533_v35 }
  0xf1   : > { %v457_v61 = vmax.f32 %v395_v58, 0.0  ;;  %v1453_v62 = vpop.f32.mrb[6].mxu0  ;;  %1468 = vmatprep.subr.bf16.mxu0 %v1537_v53 }
  0xf2   : > { %v410_v63 = vadd.f32 %v1453_v62, %v1689_v36  ;;  %v404_v0 = vpop.f32.mrb[7].mxu0  ;;  %944 = vmatpush1.bf16.msra.mxu1 %v1527_v56 }
  0xf3   : > { %v1723_v1 = vpack.c.bf16 %v458_v60, %v457_v61  ;;  %v405_v2 = vadd.f32 %v1689_v36, %v404_v0  ;;  %945 = vmatprep.subr.bf16.mxu1 %v1532_v59 }
  0xf4   : > { %v460_v5 = vmax.f32 %v410_v63, 0.0  ;;  %1469 = vmatpush3.bf16.msra.mxu0 %v1537_v53 }
  0xf5   : > { %1378 = vmatmul.mubr.msk.bf16.gmra.mrb[4].mxu1 %vm690_vm2, %v1715_v57  ;;  %1386 = vmatmul.mubr.msk.bf16.gmra.mrb[20].mxu0 %vm690_vm2, %v1715_v57  ;;  %v459_v7 = vmax.f32 %v405_v2, 0.0  ;;  %v1456_v8 = vpop.f32.mrb[8].mxu0 }
  0xf6   : > { %767 = vmatprep.mubr.bf16.mxu1 %v1548_v33  ;;  %880 = vmatprep.mubr.bf16.mxu0 %v1548_v33  ;;  %v420_v10 = vadd.f32 %v1456_v8, %v1689_v36  ;;  %v414_v11 = vpop.f32.mrb[9].mxu0 }
  0xf7   : > { %v1745_v12 = vpack.c.bf16 %v460_v5, %v459_v7  ;;  %v415_v13 = vadd.f32 %v1689_v36, %v414_v11  ;;  %946 = vmatpush1.bf16.msra.mxu1 %v1530_v3  ;;  %1470 = vmatprep.subr.bf16.mxu0 %v1538_v4 }
  0xf8   : > { %v462_v15 = vmax.f32 %v420_v10, 0.0  ;;  %947 = vmatprep.subr.bf16.mxu1 %v1536_v6  ;;  %1471 = vmatpush3.bf16.msra.mxu0 %v1538_v4 }
  0xf9   : > { %v461_v16 = vmax.f32 %v415_v13, 0.0  ;;  %v1459_v17 = vpop.f32.mrb[10].mxu0  ;;  %1472 = vmatprep.subr.bf16.mxu0 %v1539_v9 }
  0xfa   : > { %v430_v18 = vadd.f32 %v1459_v17, %v1689_v36  ;;  %v424_v19 = vpop.f32.mrb[11].mxu0 }
  0xfb   : > { %v473_v20 = vpack.c.bf16 %v462_v15, %v461_v16  ;;  %v425_v21 = vadd.f32 %v1689_v36, %v424_v19  ;;  %948 = vmatpush1.bf16.msra.mxu1 %v1534_v14 }
  0xfc   : > { %v464_v22 = vmax.f32 %v430_v18, 0.0  ;;  %1473 = vmatpush3.bf16.msra.mxu0 %v1539_v9 }
  0xfd   : > { %1379 = vmatmul.mubr.msk.bf16.gmra.mrb[8].mxu1 %vm690_vm2, %v1723_v1  ;;  %1387 = vmatmul.mubr.msk.bf16.gmra.mrb[24].mxu0 %vm690_vm2, %v1723_v1  ;;  %v463_v23 = vmax.f32 %v425_v21, 0.0  ;;  %v1462_v24 = vpop.f32.mrb[12].mxu0 }
  0xfe   : > { %777 = vmatprep.mubr.bf16.mxu1 %v1548_v33  ;;  %890 = vmatprep.mubr.bf16.mxu0 %v1548_v33  ;;  %v440_v25 = vadd.f32 %v1462_v24, %v1689_v36  ;;  %v434_v26 = vpop.f32.mrb[13].mxu0 }
  0xff   : > { %v474_v27 = vpack.c.bf16 %v464_v22, %v463_v23  ;;  %v435_v28 = vadd.f32 %v1689_v36, %v434_v26 }
 0x100   : > { %v466_v29 = vmax.f32 %v440_v25, 0.0 }
 0x101   : > { %v465_v30 = vmax.f32 %v435_v28, 0.0  ;;  %v1465_v31 = vpop.f32.mrb[14].mxu0 }
 0x102   : > { %v450_v32 = vadd.f32 %v1465_v31, %v1689_v36  ;;  %v444_v34 = vpop.f32.mrb[15].mxu0 }
 0x103   : > { %v475_v35 = vpack.c.bf16 %v466_v29, %v465_v30  ;;  %v445_v37 = vadd.f32 %v1689_v36, %v444_v34  ;;  %v511_v36 = vlaneseq }
 0x104   : > { %v468_v38 = vmax.f32 %v450_v32, 0.0 }
 0x105   : > { %1380 = vmatmul.mubr.msk.bf16.gmra.mrb[12].mxu1 %vm690_vm2, %v1745_v12  ;;  %1388 = vmatmul.mubr.msk.bf16.gmra.mrb[28].mxu0 %vm690_vm2, %v1745_v12  ;;  %v467_v39 = vmax.f32 %v445_v37, 0.0  ;;  %v1815_v41 = vshrl.u32 %v511_v36, 7 }
 0x106   : > { %787 = vmatprep.mubr.bf16.mxu1 %v1548_v33  ;;  %900 = vmatprep.mubr.bf16.mxu0 %v1548_v33 }
 0x107   : > { %v476_v40 = vpack.c.bf16 %v468_v38, %v467_v39  ;;  %v513_v42 = vsub.s32 0, %v1815_v41  ;;  %v521_v43 = vsub.s32 2, %v1815_v41  ;;  %v517_v45 = vsub.s32 1, %v1815_v41 }
 0x108   : > { %v525_v46 = vsub.s32 3, %v1815_v41 }
 0x109   : > { %v1834_v48 = vrot.slane %v1822_v44, %v517_v45 }
 0x10a   : > { %v1837_v49 = vrot.slane %v1822_v44, %v525_v46 }
 0x10d   : > { %1381 = vmatmul.mubr.msk.bf16.gmra.mrb[16].mxu1 %vm690_vm2, %v473_v20  ;;  %1389 = vmatmul.mubr.msk.bf16.gmra.mrb[32].mxu0 %vm690_vm2, %v473_v20 }
 0x10e   : > { %797 = vmatprep.mubr.bf16.mxu1 %v1548_v33  ;;  %910 = vmatprep.mubr.bf16.mxu0 %v1548_v33 }
 0x115   : > { %1382 = vmatmul.mubr.msk.bf16.gmra.mrb[20].mxu1 %vm690_vm2, %v474_v27  ;;  %1390 = vmatmul.mubr.msk.bf16.gmra.mrb[36].mxu0 %vm690_vm2, %v474_v27 }
 0x116   : > { %807 = vmatprep.mubr.bf16.mxu1 %v1548_v33  ;;  %920 = vmatprep.mubr.bf16.mxu0 %v1548_v33 }
 0x11d   : > { %1383 = vmatmul.mubr.msk.bf16.gmra.mrb[24].mxu1 %vm690_vm2, %v475_v35  ;;  %1391 = vmatmul.mubr.msk.bf16.gmra.mrb[40].mxu0 %vm690_vm2, %v475_v35 }
 0x11e   : > { %817 = vmatprep.mubr.bf16.mxu1 %v1548_v33  ;;  %930 = vmatprep.mubr.bf16.mxu0 %v1548_v33 }
 0x125   : > { %1384 = vmatmul.mubr.msk.bf16.gmra.mrb[28].mxu1 %vm690_vm2, %v476_v40  ;;  %1392 = vmatmul.mubr.msk.bf16.gmra.mrb[44].mxu0 %vm690_vm2, %v476_v40 }
 0x126   : > { %1474 = vmatprep.mubr.msk.bf16.mxu0 %vm690_vm2, %v1697_v47  ;;  %973 = vmatprep.mubr.bf16.mxu1 %v1548_v33 }
 0x12d   : > { %1393 = vmatmul.mubr.msk.bf16.vlgmr.msra.gmra.mrb[32].mxu1 %vm690_vm2, %v1697_v47  ;;  %1475 = vmatmul.mubr.msk.bf16.vlgmr.msra.gmra.mrb[48].mxu0 %vm690_vm2, %v1715_v57  ;;  %v1831_v47 = vrot.slane %v1822_v44, %v521_v43 }
 0x12e   : > { %1478 = vmatprep.mubr.msk.bf16.mxu0 %vm690_vm2, %v1723_v1  ;;  %983 = vmatprep.mubr.bf16.mxu1 %v1548_v33 }
 0x135   : > { %1394 = vmatmul.mubr.msk.bf16.gmra.mrb[36].mxu1 %vm690_vm2, %v1715_v57  ;;  %1479 = vmatmul.mubr.msk.bf16.gmra.mrb[52].mxu0 %vm690_vm2, %v1745_v12 }
 0x136   : > { %1482 = vmatprep.mubr.msk.bf16.mxu0 %vm690_vm2, %v473_v20  ;;  %993 = vmatprep.mubr.bf16.mxu1 %v1548_v33 }
 0x13d   : > { %1395 = vmatmul.mubr.msk.bf16.gmra.mrb[40].mxu1 %vm690_vm2, %v1723_v1  ;;  %1483 = vmatmul.mubr.msk.bf16.gmra.mrb[56].mxu0 %vm690_vm2, %v474_v27 }
 0x13e   : > { %1486 = vmatprep.mubr.msk.bf16.mxu0 %vm690_vm2, %v475_v35  ;;  %1003 = vmatprep.mubr.bf16.mxu1 %v1548_v33 }
 0x145   : > { %1396 = vmatmul.mubr.msk.bf16.gmra.mrb[44].mxu1 %vm690_vm2, %v1745_v12  ;;  %1487 = vmatmul.mubr.msk.bf16.gmra.mrb[60].mxu0 %vm690_vm2, %v476_v40 }
 0x146   : > { %1013 = vmatprep.mubr.bf16.mxu1 %v1548_v33 }
 0x14d   : > { %1397 = vmatmul.mubr.msk.bf16.gmra.mrb[48].mxu1 %vm690_vm2, %v473_v20 }
 0x14e   : > { %1023 = vmatprep.mubr.bf16.mxu1 %v1548_v33 }
 0x155   : > { %1398 = vmatmul.mubr.msk.bf16.gmra.mrb[52].mxu1 %vm690_vm2, %v474_v27 }
 0x156   : > { %1033 = vmatprep.mubr.bf16.mxu1 %v1548_v33 }
 0x15d   : > { %1399 = vmatmul.mubr.msk.bf16.gmra.mrb[56].mxu1 %vm690_vm2, %v475_v35 }
 0x15e   : > { %1043 = vmatprep.mubr.bf16.mxu1 %v1548_v33  ;;  %v1828_v33 = vrot.slane %v1822_v44, %v513_v42 }
 0x165   : > { %1400 = vmatmul.mubr.msk.bf16.gmra.mrb[60].mxu1 %vm690_vm2, %v476_v40 }
 0x1c0   : > { %v749_v50 = vpop.f32.mrb[0].mxu1  ;;  %v862_v51 = vpop.f32.mrb[16].mxu0 }
 0x1c1   : > { %v750_v52 = vadd.f32 %v749_v50, %v1828_v33  ;;  %v863_v53 = vadd.f32 %v862_v51, %v1831_v47  ;;  %v751_v54 = vpop.f32.mrb[1].mxu1  ;;  %v864_v55 = vpop.f32.mrb[17].mxu0 }
 0x1c2   : > { %v752_v56 = vadd.f32 %v751_v54, %v1834_v48  ;;  %v865_v57 = vadd.f32 %v864_v55, %v1837_v49  ;;  %v753_v58 = vpop.f32.mrb[2].mxu1  ;;  %v866_v59 = vpop.f32.mrb[18].mxu0 }
 0x1c3   : > { %1151 = vst [vmem:[%s1842_s20] sm:$0xff] %v750_v52  ;;  %1153 = vst [vmem:[%s1842_s20 + $0x10] sm:$0xff] %v863_v53  ;;  %v754_v60 = vadd.f32 %v753_v58, %v1828_v33  ;;  %v867_v61 = vadd.f32 %v866_v59, %v1831_v47  ;;  %v755_v62 = vpop.f32.mrb[3].mxu1  ;;  %v868_v63 = vpop.f32.mrb[19].mxu0 }
 0x1c4   : > { %1152 = vst [vmem:[%s1842_s20 + $0x8] sm:$0xff] %v752_v56  ;;  %1154 = vst [vmem:[%s1842_s20 + $0x18] sm:$0xff] %v865_v57  ;;  %v756_v0 = vadd.f32 %v755_v62, %v1834_v48  ;;  %v869_v1 = vadd.f32 %v868_v63, %v1837_v49 }
 0x1c5   : > { %1159 = vst [vmem:[%s1842_s20 + $0x38] sm:$0xff] %v754_v60  ;;  %1161 = vst [vmem:[%s1842_s20 + $0x48] sm:$0xff] %v867_v61 }
 0x1c6   : > { %1160 = vst [vmem:[%s1842_s20 + $0x40] sm:$0xff] %v756_v0  ;;  %1162 = vst [vmem:[%s1842_s20 + $0x50] sm:$0xff] %v869_v1 }
 0x1c8   : > { %v759_v2 = vpop.f32.mrb[4].mxu1  ;;  %v872_v3 = vpop.f32.mrb[20].mxu0 }
 0x1c9   : > { %v760_v4 = vadd.f32 %v759_v2, %v1828_v33  ;;  %v873_v5 = vadd.f32 %v872_v3, %v1831_v47  ;;  %v761_v6 = vpop.f32.mrb[5].mxu1  ;;  %v874_v7 = vpop.f32.mrb[21].mxu0 }
 0x1ca   : > { %v762_v8 = vadd.f32 %v761_v6, %v1834_v48  ;;  %v875_v9 = vadd.f32 %v874_v7, %v1837_v49  ;;  %v763_v10 = vpop.f32.mrb[6].mxu1  ;;  %v876_v11 = vpop.f32.mrb[22].mxu0 }
 0x1cb   : > { %1166 = vst [vmem:[%s1842_s20 + $0x70] sm:$0xff] %v760_v4  ;;  %1168 = vst [vmem:[%s1842_s20 + $0x80] sm:$0xff] %v873_v5  ;;  %v764_v12 = vadd.f32 %v763_v10, %v1828_v33  ;;  %v877_v13 = vadd.f32 %v876_v11, %v1831_v47  ;;  %v765_v14 = vpop.f32.mrb[7].mxu1  ;;  %v878_v15 = vpop.f32.mrb[23].mxu0 }
 0x1cc   : > { %1167 = vst [vmem:[%s1842_s20 + $0x78] sm:$0xff] %v762_v8  ;;  %1169 = vst [vmem:[%s1842_s20 + $0x88] sm:$0xff] %v875_v9  ;;  %v766_v16 = vadd.f32 %v765_v14, %v1834_v48  ;;  %v879_v17 = vadd.f32 %v878_v15, %v1837_v49 }
 0x1cd   : > { %1173 = vst [vmem:[%s1842_s20 + $0xa8] sm:$0xff] %v764_v12  ;;  %1175 = vst [vmem:[%s1842_s20 + $0xb8] sm:$0xff] %v877_v13 }
 0x1ce   : > { %1174 = vst [vmem:[%s1842_s20 + $0xb0] sm:$0xff] %v766_v16  ;;  %1176 = vst [vmem:[%s1842_s20 + $0xc0] sm:$0xff] %v879_v17 }
 0x1d0   : > { %v769_v18 = vpop.f32.mrb[8].mxu1  ;;  %v882_v19 = vpop.f32.mrb[24].mxu0 }
 0x1d1   : > { %v770_v20 = vadd.f32 %v769_v18, %v1828_v33  ;;  %v883_v21 = vadd.f32 %v882_v19, %v1831_v47  ;;  %v771_v22 = vpop.f32.mrb[9].mxu1  ;;  %v884_v23 = vpop.f32.mrb[25].mxu0 }
 0x1d2   : > { %v772_v24 = vadd.f32 %v771_v22, %v1834_v48  ;;  %v885_v25 = vadd.f32 %v884_v23, %v1837_v49  ;;  %v773_v26 = vpop.f32.mrb[10].mxu1  ;;  %v886_v27 = vpop.f32.mrb[26].mxu0 }
 0x1d3   : > { %1180 = vst [vmem:[%s1842_s20 + $0xe0] sm:$0xff] %v770_v20  ;;  %1182 = vst [vmem:[%s1842_s20 + $0xf0] sm:$0xff] %v883_v21  ;;  %v774_v28 = vadd.f32 %v773_v26, %v1828_v33  ;;  %v887_v29 = vadd.f32 %v886_v27, %v1831_v47  ;;  %v775_v30 = vpop.f32.mrb[11].mxu1  ;;  %v888_v31 = vpop.f32.mrb[27].mxu0 }
 0x1d4   : > { %1181 = vst [vmem:[%s1842_s20 + $0xe8] sm:$0xff] %v772_v24  ;;  %1183 = vst [vmem:[%s1842_s20 + $0xf8] sm:$0xff] %v885_v25  ;;  %v776_v32 = vadd.f32 %v775_v30, %v1834_v48  ;;  %v889_v34 = vadd.f32 %v888_v31, %v1837_v49 }
 0x1d5   : > { %1187 = vst [vmem:[%s1842_s20 + $0x118] sm:$0xff] %v774_v28  ;;  %1189 = vst [vmem:[%s1842_s20 + $0x128] sm:$0xff] %v887_v29 }
 0x1d6   : > { %1188 = vst [vmem:[%s1842_s20 + $0x120] sm:$0xff] %v776_v32  ;;  %1190 = vst [vmem:[%s1842_s20 + $0x130] sm:$0xff] %v889_v34 }
 0x1d8   : > { %v779_v35 = vpop.f32.mrb[12].mxu1  ;;  %v892_v37 = vpop.f32.mrb[28].mxu0 }
 0x1d9   : > { %v780_v38 = vadd.f32 %v779_v35, %v1828_v33  ;;  %v893_v39 = vadd.f32 %v892_v37, %v1831_v47  ;;  %v781_v40 = vpop.f32.mrb[13].mxu1  ;;  %v894_v36 = vpop.f32.mrb[29].mxu0 }
 0x1da   : > { %v782_v42 = vadd.f32 %v781_v40, %v1834_v48  ;;  %v895_v43 = vadd.f32 %v894_v36, %v1837_v49  ;;  %v783_v45 = vpop.f32.mrb[14].mxu1  ;;  %v896_v46 = vpop.f32.mrb[30].mxu0 }
 0x1db   : > { %1194 = vst [vmem:[%s1842_s20 + $0x150] sm:$0xff] %v780_v38  ;;  %1196 = vst [vmem:[%s1842_s20 + $0x160] sm:$0xff] %v893_v39  ;;  %v784_v50 = vadd.f32 %v783_v45, %v1828_v33  ;;  %v897_v51 = vadd.f32 %v896_v46, %v1831_v47  ;;  %v785_v52 = vpop.f32.mrb[15].mxu1  ;;  %v898_v53 = vpop.f32.mrb[31].mxu0 }
 0x1dc   : > { %1195 = vst [vmem:[%s1842_s20 + $0x158] sm:$0xff] %v782_v42  ;;  %1197 = vst [vmem:[%s1842_s20 + $0x168] sm:$0xff] %v895_v43  ;;  %v786_v54 = vadd.f32 %v785_v52, %v1834_v48  ;;  %v899_v55 = vadd.f32 %v898_v53, %v1837_v49  ;;  %v529_v52 = vsub.s32 4, %v1815_v41  ;;  %v537_v53 = vsub.s32 6, %v1815_v41 }
 0x1dd   : > { %1201 = vst [vmem:[%s1842_s20 + $0x188] sm:$0xff] %v784_v50  ;;  %1203 = vst [vmem:[%s1842_s20 + $0x198] sm:$0xff] %v897_v51 }
 0x1de   : > { %1202 = vst [vmem:[%s1842_s20 + $0x190] sm:$0xff] %v786_v54  ;;  %1204 = vst [vmem:[%s1842_s20 + $0x1a0] sm:$0xff] %v899_v55 }
 0x1e0   : > { %v789_v56 = vpop.f32.mrb[16].mxu1  ;;  %v902_v57 = vpop.f32.mrb[32].mxu0 }
 0x1e1   : > { %v790_v58 = vadd.f32 %v789_v56, %v1828_v33  ;;  %v903_v59 = vadd.f32 %v902_v57, %v1831_v47  ;;  %v791_v60 = vpop.f32.mrb[17].mxu1  ;;  %v904_v61 = vpop.f32.mrb[33].mxu0 }
 0x1e2   : > { %v792_v62 = vadd.f32 %v791_v60, %v1834_v48  ;;  %v905_v63 = vadd.f32 %v904_v61, %v1837_v49  ;;  %v793_v0 = vpop.f32.mrb[18].mxu1  ;;  %v906_v1 = vpop.f32.mrb[34].mxu0 }
 0x1e3   : > { %1208 = vst [vmem:[%s1842_s20 + $0x1c0] sm:$0xff] %v790_v58  ;;  %1210 = vst [vmem:[%s1842_s20 + $0x1d0] sm:$0xff] %v903_v59  ;;  %v794_v2 = vadd.f32 %v793_v0, %v1828_v33  ;;  %v907_v3 = vadd.f32 %v906_v1, %v1831_v47  ;;  %v795_v4 = vpop.f32.mrb[19].mxu1  ;;  %v908_v5 = vpop.f32.mrb[35].mxu0  ;;  %v533_v58 = vsub.s32 5, %v1815_v41  ;;  %v1974_v1 = vrot.slane %v1822_v44, %v529_v52 }
 0x1e4   : > { %1209 = vst [vmem:[%s1842_s20 + $0x1c8] sm:$0xff] %v792_v62  ;;  %1211 = vst [vmem:[%s1842_s20 + $0x1d8] sm:$0xff] %v905_v63  ;;  %v796_v6 = vadd.f32 %v795_v4, %v1834_v48  ;;  %v909_v7 = vadd.f32 %v908_v5, %v1837_v49  ;;  %v1977_v41 = vrot.slane %v1822_v44, %v537_v53 }
 0x1e5   : > { %1215 = vst [vmem:[%s1842_s20 + $0x1f8] sm:$0xff] %v794_v2  ;;  %1217 = vst [vmem:[%s1842_s20 + $0x208] sm:$0xff] %v907_v3 }
 0x1e6   : > { %1216 = vst [vmem:[%s1842_s20 + $0x200] sm:$0xff] %v796_v6  ;;  %1218 = vst [vmem:[%s1842_s20 + $0x210] sm:$0xff] %v909_v7 }
 0x1e8   : > { %v799_v8 = vpop.f32.mrb[20].mxu1  ;;  %v912_v9 = vpop.f32.mrb[36].mxu0 }
 0x1e9   : > { %v800_v10 = vadd.f32 %v799_v8, %v1828_v33  ;;  %v913_v11 = vadd.f32 %v912_v9, %v1831_v47  ;;  %v801_v12 = vpop.f32.mrb[21].mxu1  ;;  %v914_v13 = vpop.f32.mrb[37].mxu0 }
 0x1ea   : > { %v802_v14 = vadd.f32 %v801_v12, %v1834_v48  ;;  %v915_v15 = vadd.f32 %v914_v13, %v1837_v49  ;;  %v803_v16 = vpop.f32.mrb[22].mxu1  ;;  %v916_v17 = vpop.f32.mrb[38].mxu0 }
 0x1eb   : > { %1222 = vst [vmem:[%s1842_s20 + $0x230] sm:$0xff] %v800_v10  ;;  %1224 = vst [vmem:[%s1842_s20 + $0x240] sm:$0xff] %v913_v11  ;;  %v804_v18 = vadd.f32 %v803_v16, %v1828_v33  ;;  %v917_v19 = vadd.f32 %v916_v17, %v1831_v47  ;;  %v805_v20 = vpop.f32.mrb[23].mxu1  ;;  %v918_v21 = vpop.f32.mrb[39].mxu0 }
 0x1ec   : > { %1223 = vst [vmem:[%s1842_s20 + $0x238] sm:$0xff] %v802_v14  ;;  %1225 = vst [vmem:[%s1842_s20 + $0x248] sm:$0xff] %v915_v15  ;;  %v806_v22 = vadd.f32 %v805_v20, %v1834_v48  ;;  %v919_v23 = vadd.f32 %v918_v21, %v1837_v49 }
 0x1ed   : > { %1229 = vst [vmem:[%s1842_s20 + $0x268] sm:$0xff] %v804_v18  ;;  %1231 = vst [vmem:[%s1842_s20 + $0x278] sm:$0xff] %v917_v19 }
 0x1ee   : > { %1230 = vst [vmem:[%s1842_s20 + $0x270] sm:$0xff] %v806_v22  ;;  %1232 = vst [vmem:[%s1842_s20 + $0x280] sm:$0xff] %v919_v23 }
 0x1f0   : > { %v809_v24 = vpop.f32.mrb[24].mxu1  ;;  %v922_v25 = vpop.f32.mrb[40].mxu0 }
 0x1f1   : > { %v810_v26 = vadd.f32 %v809_v24, %v1828_v33  ;;  %v923_v27 = vadd.f32 %v922_v25, %v1831_v47  ;;  %v811_v28 = vpop.f32.mrb[25].mxu1  ;;  %v924_v29 = vpop.f32.mrb[41].mxu0 }
 0x1f2   : > { %v812_v30 = vadd.f32 %v811_v28, %v1834_v48  ;;  %v925_v31 = vadd.f32 %v924_v29, %v1837_v49  ;;  %v813_v32 = vpop.f32.mrb[26].mxu1  ;;  %v926_v34 = vpop.f32.mrb[42].mxu0 }
 0x1f3   : > { %1236 = vst [vmem:[%s1842_s20 + $0x2a0] sm:$0xff] %v810_v26  ;;  %1238 = vst [vmem:[%s1842_s20 + $0x2b0] sm:$0xff] %v923_v27  ;;  %v814_v35 = vadd.f32 %v813_v32, %v1828_v33  ;;  %v927_v37 = vadd.f32 %v926_v34, %v1831_v47  ;;  %v815_v38 = vpop.f32.mrb[27].mxu1  ;;  %v928_v39 = vpop.f32.mrb[43].mxu0 }
 0x1f4   : > { %1237 = vst [vmem:[%s1842_s20 + $0x2a8] sm:$0xff] %v812_v30  ;;  %1239 = vst [vmem:[%s1842_s20 + $0x2b8] sm:$0xff] %v925_v31  ;;  %v816_v40 = vadd.f32 %v815_v38, %v1834_v48  ;;  %v929_v36 = vadd.f32 %v928_v39, %v1837_v49 }
 0x1f5   : > { %1243 = vst [vmem:[%s1842_s20 + $0x2d8] sm:$0xff] %v814_v35  ;;  %1245 = vst [vmem:[%s1842_s20 + $0x2e8] sm:$0xff] %v927_v37 }
 0x1f6   : > { %1244 = vst [vmem:[%s1842_s20 + $0x2e0] sm:$0xff] %v816_v40  ;;  %1246 = vst [vmem:[%s1842_s20 + $0x2f0] sm:$0xff] %v929_v36 }
 0x1f8   : > { %v819_v42 = vpop.f32.mrb[28].mxu1  ;;  %v932_v43 = vpop.f32.mrb[44].mxu0 }
 0x1f9   : > { %v820_v45 = vadd.f32 %v819_v42, %v1828_v33  ;;  %v933_v46 = vadd.f32 %v932_v43, %v1831_v47  ;;  %v821_v50 = vpop.f32.mrb[29].mxu1  ;;  %v934_v51 = vpop.f32.mrb[45].mxu0 }
 0x1fa   : > { %v822_v54 = vadd.f32 %v821_v50, %v1834_v48  ;;  %v935_v55 = vadd.f32 %v934_v51, %v1837_v49  ;;  %v823_v56 = vpop.f32.mrb[30].mxu1  ;;  %v936_v57 = vpop.f32.mrb[46].mxu0 }
 0x1fb   : > { %1250 = vst [vmem:[%s1842_s20 + $0x310] sm:$0xff] %v820_v45  ;;  %1252 = vst [vmem:[%s1842_s20 + $0x320] sm:$0xff] %v933_v46  ;;  %v824_v59 = vadd.f32 %v823_v56, %v1828_v33  ;;  %v937_v60 = vadd.f32 %v936_v57, %v1831_v47  ;;  %v825_v61 = vpop.f32.mrb[31].mxu1  ;;  %v938_v62 = vpop.f32.mrb[47].mxu0  ;;  %v1982_v33 = vrot.slane %v1822_v44, %v533_v58 }
 0x1fc   : > { %1251 = vst [vmem:[%s1842_s20 + $0x318] sm:$0xff] %v822_v54  ;;  %1253 = vst [vmem:[%s1842_s20 + $0x328] sm:$0xff] %v935_v55  ;;  %v826_v63 = vadd.f32 %v825_v61, %v1834_v48  ;;  %v939_v0 = vadd.f32 %v938_v62, %v1837_v49 }
 0x1fd   : > { %1257 = vst [vmem:[%s1842_s20 + $0x348] sm:$0xff] %v824_v59  ;;  %1259 = vst [vmem:[%s1842_s20 + $0x358] sm:$0xff] %v937_v60 }
 0x1fe   : > { %1258 = vst [vmem:[%s1842_s20 + $0x350] sm:$0xff] %v826_v63  ;;  %1260 = vst [vmem:[%s1842_s20 + $0x360] sm:$0xff] %v939_v0 }
 0x200   : > { %v975_v47 = vpop.f32.mrb[32].mxu1  ;;  %v1476_v2 = vpop.f32.mrb[48].mxu0 }
 0x201   : > { %v976_v48 = vadd.f32 %v975_v47, %v1974_v1  ;;  %v1097_v49 = vadd.f32 %v1476_v2, %v1977_v41  ;;  %v977_v3 = vpop.f32.mrb[33].mxu1  ;;  %v1088_v4 = vpop.f32.mrb[49].mxu0 }
 0x202   : > { %v978_v5 = vadd.f32 %v977_v3, %v1982_v33  ;;  %v1089_v6 = vadd.f32 %v1088_v4, %v1977_v41  ;;  %v979_v44 = vpop.f32.mrb[34].mxu1  ;;  %v1477_v7 = vpop.f32.mrb[50].mxu0 }
 0x203   : > { %1155 = vst [vmem:[%s1842_s20 + $0x20] sm:$0xff] %v976_v48  ;;  %1172 = vst.msk [vmem:[%s1842_s20 + $0xa0] sm:$0xff] %vm1157_vm3, %v1097_v49  ;;  %v980_v8 = vadd.f32 %v979_v44, %v1974_v1  ;;  %v1100_v9 = vadd.f32 %v1477_v7, %v1977_v41  ;;  %v981_v10 = vpop.f32.mrb[35].mxu1  ;;  %v1091_v11 = vpop.f32.mrb[51].mxu0 }
 0x204   : > { %1156 = vst [vmem:[%s1842_s20 + $0x28] sm:$0xff] %v978_v5  ;;  %1158 = vst.msk [vmem:[%s1842_s20 + $0x30] sm:$0xff] %vm1157_vm3, %v1089_v6  ;;  %v982_v12 = vadd.f32 %v981_v10, %v1982_v33  ;;  %v1092_v13 = vadd.f32 %v1091_v11, %v1977_v41 }
 0x205   : > { %1163 = vst [vmem:[%s1842_s20 + $0x58] sm:$0xff] %v980_v8  ;;  %1179 = vst.msk [vmem:[%s1842_s20 + $0xd8] sm:$0xff] %vm1157_vm3, %v1100_v9 }
 0x206   : > { %1164 = vst [vmem:[%s1842_s20 + $0x60] sm:$0xff] %v982_v12  ;;  %1165 = vst.msk [vmem:[%s1842_s20 + $0x68] sm:$0xff] %vm1157_vm3, %v1092_v13 }
 0x208   : > { %v985_v14 = vpop.f32.mrb[36].mxu1  ;;  %v1480_v15 = vpop.f32.mrb[52].mxu0 }
 0x209   : > { %v986_v16 = vadd.f32 %v985_v14, %v1974_v1  ;;  %v1113_v17 = vadd.f32 %v1480_v15, %v1977_v41  ;;  %v987_v18 = vpop.f32.mrb[37].mxu1  ;;  %v1104_v19 = vpop.f32.mrb[53].mxu0 }
 0x20a   : > { %v988_v20 = vadd.f32 %v987_v18, %v1982_v33  ;;  %v1105_v21 = vadd.f32 %v1104_v19, %v1977_v41  ;;  %v989_v22 = vpop.f32.mrb[38].mxu1  ;;  %v1481_v23 = vpop.f32.mrb[54].mxu0 }
 0x20b   : > { %1170 = vst [vmem:[%s1842_s20 + $0x90] sm:$0xff] %v986_v16  ;;  %1200 = vst.msk [vmem:[%s1842_s20 + $0x180] sm:$0xff] %vm1157_vm3, %v1113_v17  ;;  %v990_v24 = vadd.f32 %v989_v22, %v1974_v1  ;;  %v1116_v25 = vadd.f32 %v1481_v23, %v1977_v41  ;;  %v991_v26 = vpop.f32.mrb[39].mxu1  ;;  %v1107_v27 = vpop.f32.mrb[55].mxu0 }
 0x20c   : > { %1171 = vst [vmem:[%s1842_s20 + $0x98] sm:$0xff] %v988_v20  ;;  %1186 = vst.msk [vmem:[%s1842_s20 + $0x110] sm:$0xff] %vm1157_vm3, %v1105_v21  ;;  %v992_v28 = vadd.f32 %v991_v26, %v1982_v33  ;;  %v1108_v29 = vadd.f32 %v1107_v27, %v1977_v41 }
 0x20d   : > { %1177 = vst [vmem:[%s1842_s20 + $0xc8] sm:$0xff] %v990_v24  ;;  %1207 = vst.msk [vmem:[%s1842_s20 + $0x1b8] sm:$0xff] %vm1157_vm3, %v1116_v25 }
 0x20e   : > { %1178 = vst [vmem:[%s1842_s20 + $0xd0] sm:$0xff] %v992_v28  ;;  %1193 = vst.msk [vmem:[%s1842_s20 + $0x148] sm:$0xff] %vm1157_vm3, %v1108_v29 }
 0x210   : > { %v995_v30 = vpop.f32.mrb[40].mxu1  ;;  %v1484_v31 = vpop.f32.mrb[56].mxu0 }
 0x211   : > { %v996_v32 = vadd.f32 %v995_v30, %v1974_v1  ;;  %v1129_v34 = vadd.f32 %v1484_v31, %v1977_v41  ;;  %v997_v35 = vpop.f32.mrb[41].mxu1  ;;  %v1120_v37 = vpop.f32.mrb[57].mxu0 }
 0x212   : > { %v998_v38 = vadd.f32 %v997_v35, %v1982_v33  ;;  %v1121_v39 = vadd.f32 %v1120_v37, %v1977_v41  ;;  %v999_v40 = vpop.f32.mrb[42].mxu1  ;;  %v1485_v36 = vpop.f32.mrb[58].mxu0 }
 0x213   : > { %1184 = vst [vmem:[%s1842_s20 + $0x100] sm:$0xff] %v996_v32  ;;  %1228 = vst.msk [vmem:[%s1842_s20 + $0x260] sm:$0xff] %vm1157_vm3, %v1129_v34  ;;  %v1000_v42 = vadd.f32 %v999_v40, %v1974_v1  ;;  %v1132_v43 = vadd.f32 %v1485_v36, %v1977_v41  ;;  %v1001_v45 = vpop.f32.mrb[43].mxu1  ;;  %v1123_v46 = vpop.f32.mrb[59].mxu0 }
 0x214   : > { %1185 = vst [vmem:[%s1842_s20 + $0x108] sm:$0xff] %v998_v38  ;;  %1214 = vst.msk [vmem:[%s1842_s20 + $0x1f0] sm:$0xff] %vm1157_vm3, %v1121_v39  ;;  %v1002_v50 = vadd.f32 %v1001_v45, %v1982_v33  ;;  %v1124_v51 = vadd.f32 %v1123_v46, %v1977_v41 }
 0x215   : > { %1191 = vst [vmem:[%s1842_s20 + $0x138] sm:$0xff] %v1000_v42  ;;  %1235 = vst.msk [vmem:[%s1842_s20 + $0x298] sm:$0xff] %vm1157_vm3, %v1132_v43 }
 0x216   : > { %1192 = vst [vmem:[%s1842_s20 + $0x140] sm:$0xff] %v1002_v50  ;;  %1221 = vst.msk [vmem:[%s1842_s20 + $0x228] sm:$0xff] %vm1157_vm3, %v1124_v51 }
 0x218   : > { %v1005_v52 = vpop.f32.mrb[44].mxu1  ;;  %v1488_v53 = vpop.f32.mrb[60].mxu0 }
 0x219   : > { %v1006_v54 = vadd.f32 %v1005_v52, %v1974_v1  ;;  %v1145_v55 = vadd.f32 %v1488_v53, %v1977_v41  ;;  %v1007_v56 = vpop.f32.mrb[45].mxu1  ;;  %v1136_v57 = vpop.f32.mrb[61].mxu0 }
 0x21a   : > { %v1008_v58 = vadd.f32 %v1007_v56, %v1982_v33  ;;  %v1137_v59 = vadd.f32 %v1136_v57, %v1977_v41  ;;  %v1009_v60 = vpop.f32.mrb[46].mxu1  ;;  %v1489_v61 = vpop.f32.mrb[62].mxu0 }
 0x21b   : > { %1198 = vst [vmem:[%s1842_s20 + $0x170] sm:$0xff] %v1006_v54  ;;  %1256 = vst.msk [vmem:[%s1842_s20 + $0x340] sm:$0xff] %vm1157_vm3, %v1145_v55  ;;  %v1010_v62 = vadd.f32 %v1009_v60, %v1974_v1  ;;  %v1148_v63 = vadd.f32 %v1489_v61, %v1977_v41  ;;  %v1011_v0 = vpop.f32.mrb[47].mxu1  ;;  %v1139_v47 = vpop.f32.mrb[63].mxu0 }
 0x21c   : > { %1199 = vst [vmem:[%s1842_s20 + $0x178] sm:$0xff] %v1008_v58  ;;  %1242 = vst.msk [vmem:[%s1842_s20 + $0x2d0] sm:$0xff] %vm1157_vm3, %v1137_v59  ;;  %v1012_v2 = vadd.f32 %v1011_v0, %v1982_v33  ;;  %v1140_v48 = vadd.f32 %v1139_v47, %v1977_v41 }
 0x21d   : > { %1205 = vst [vmem:[%s1842_s20 + $0x1a8] sm:$0xff] %v1010_v62  ;;  %1263 = vst.msk [vmem:[%s1842_s20 + $0x378] sm:$0xff] %vm1157_vm3, %v1148_v63 }
 0x21e   : > { %1206 = vst [vmem:[%s1842_s20 + $0x1b0] sm:$0xff] %v1012_v2  ;;  %1249 = vst.msk [vmem:[%s1842_s20 + $0x308] sm:$0xff] %vm1157_vm3, %v1140_v48 }
 0x220   : > { %v1015_v49 = vpop.f32.mrb[48].mxu1 }
 0x221   : > { %v1016_v3 = vadd.f32 %v1015_v49, %v1974_v1  ;;  %v1017_v4 = vpop.f32.mrb[49].mxu1 }
 0x222   : > { %v1018_v5 = vadd.f32 %v1017_v4, %v1982_v33  ;;  %v1019_v6 = vpop.f32.mrb[50].mxu1 }
 0x223   : > { %1212 = vst [vmem:[%s1842_s20 + $0x1e0] sm:$0xff] %v1016_v3  ;;  %v1020_v44 = vadd.f32 %v1019_v6, %v1974_v1  ;;  %v1021_v41 = vpop.f32.mrb[51].mxu1 }
 0x224   : > { %1213 = vst [vmem:[%s1842_s20 + $0x1e8] sm:$0xff] %v1018_v5  ;;  %v1022_v7 = vadd.f32 %v1021_v41, %v1982_v33 }
 0x225   : > { %1219 = vst [vmem:[%s1842_s20 + $0x218] sm:$0xff] %v1020_v44 }
 0x226   : > { %1220 = vst [vmem:[%s1842_s20 + $0x220] sm:$0xff] %v1022_v7 }
 0x228   : > { %v1025_v8 = vpop.f32.mrb[52].mxu1 }
 0x229   : > { %v1026_v9 = vadd.f32 %v1025_v8, %v1974_v1  ;;  %v1027_v10 = vpop.f32.mrb[53].mxu1 }
 0x22a   : > { %v1028_v11 = vadd.f32 %v1027_v10, %v1982_v33  ;;  %v1029_v12 = vpop.f32.mrb[54].mxu1 }
 0x22b   : > { %1226 = vst [vmem:[%s1842_s20 + $0x250] sm:$0xff] %v1026_v9  ;;  %v1030_v13 = vadd.f32 %v1029_v12, %v1974_v1  ;;  %v1031_v14 = vpop.f32.mrb[55].mxu1 }
 0x22c   : > { %1227 = vst [vmem:[%s1842_s20 + $0x258] sm:$0xff] %v1028_v11  ;;  %v1032_v15 = vadd.f32 %v1031_v14, %v1982_v33 }
 0x22d   : > { %1233 = vst [vmem:[%s1842_s20 + $0x288] sm:$0xff] %v1030_v13 }
 0x22e   : > { %1234 = vst [vmem:[%s1842_s20 + $0x290] sm:$0xff] %v1032_v15 }
 0x230   : > { %v1035_v16 = vpop.f32.mrb[56].mxu1 }
 0x231   : > { %v1036_v17 = vadd.f32 %v1035_v16, %v1974_v1  ;;  %v1037_v18 = vpop.f32.mrb[57].mxu1 }
 0x232   : > { %v1038_v19 = vadd.f32 %v1037_v18, %v1982_v33  ;;  %v1039_v20 = vpop.f32.mrb[58].mxu1 }
 0x233   : > { %1240 = vst [vmem:[%s1842_s20 + $0x2c0] sm:$0xff] %v1036_v17  ;;  %v1040_v21 = vadd.f32 %v1039_v20, %v1974_v1  ;;  %v1041_v22 = vpop.f32.mrb[59].mxu1 }
 0x234   : > { %1241 = vst [vmem:[%s1842_s20 + $0x2c8] sm:$0xff] %v1038_v19  ;;  %v1042_v23 = vadd.f32 %v1041_v22, %v1982_v33 }
 0x235   : > { %1247 = vst [vmem:[%s1842_s20 + $0x2f8] sm:$0xff] %v1040_v21 }
 0x236   : > { %1248 = vst [vmem:[%s1842_s20 + $0x300] sm:$0xff] %v1042_v23 }
 0x238   : > { %v1045_v24 = vpop.f32.mrb[60].mxu1 }
 0x239   : > { %v1046_v25 = vadd.f32 %v1045_v24, %v1974_v1  ;;  %v1047_v26 = vpop.f32.mrb[61].mxu1 }
 0x23a   : > { %v1048_v27 = vadd.f32 %v1047_v26, %v1982_v33  ;;  %v1049_v28 = vpop.f32.mrb[62].mxu1 }
 0x23b   : > { %1254 = vst [vmem:[%s1842_s20 + $0x330] sm:$0xff] %v1046_v25  ;;  %v1050_v29 = vadd.f32 %v1049_v28, %v1974_v1  ;;  %v1051_v30 = vpop.f32.mrb[63].mxu1 }
 0x23c   : > { %1255 = vst [vmem:[%s1842_s20 + $0x338] sm:$0xff] %v1048_v27  ;;  %v1052_v31 = vadd.f32 %v1051_v30, %v1982_v33 }
 0x23d   : > { %1261 = vst [vmem:[%s1842_s20 + $0x368] sm:$0xff] %v1050_v29 }
 0x23e   : > { %1262 = vst [vmem:[%s1842_s20 + $0x370] sm:$0xff] %v1052_v31 }
 0x23f PF: > { %s15_s18 = sadd.s32 1, %s1546_s18  }
 0x240   : > { %p12_p4 = scmp.ge.s32.totalorder %s15_s18, 4  }
 0x242   :  { %14 = sbr.rel (!%p12_p4) target bundleno = 1 (0x1), region = 70 }

</bundles_post_ra>
